<compile_context>
chip_gen: v6e
topology: v6e:2x2x1
jax: 0.10.0
libtpu: 0.0.40
codegen_flags: <defaults>
</compile_context>

<pallas_src>
import functools

import jax
import jax.numpy as jnp
from jax.experimental import pallas as pl
from jax.experimental.pallas import tpu as pltpu

EPS = 1e-5
H1, H2 = 300, 100                       # hidden sizes fixed by the module
VMEM_LIMIT = 32 * 1024 * 1024           # safe on v5e/v6e/v7x; footprint is small


def _round_up(a, b):
    return (a + b - 1) // b * b


def _row_mask(tile_m, n_real):
    """(tile_m, 1) bool mask: which rows of this tile are real (un-padded) batch rows."""
    rows = pl.program_id(0) * tile_m + jax.lax.broadcasted_iota(
        jnp.int32, (tile_m, 1), 0)
    return rows < n_real


# --------------------------------------------------------------------------- #
# Kernels
# --------------------------------------------------------------------------- #
def _linear_stats_kernel(x_ref, w_ref, b_ref, z_ref, stats_ref,
                         sum_ref, sumsq_ref, *, tile_m, n_real):
    """z = x @ W + b per batch tile; accumulates full-batch per-feature mean/var."""
    i = pl.program_id(0)

    @pl.when(i == 0)
    def _():
        sum_ref[...] = jnp.zeros_like(sum_ref)
        sumsq_ref[...] = jnp.zeros_like(sumsq_ref)

    # fc: bf16 MXU operands, f32 accumulation
    z = jnp.dot(x_ref[...].astype(jnp.bfloat16), w_ref[...],
                preferred_element_type=jnp.float32) + b_ref[...]
    z_ref[...] = z

    # full-batch statistics (padded batch rows masked out)
    zm = jnp.where(_row_mask(tile_m, n_real), z, 0.0)
    sum_ref[...] += jnp.sum(zm, axis=0, keepdims=True)
    sumsq_ref[...] += jnp.sum(zm * zm, axis=0, keepdims=True)

    # running mean / biased variance; exact after the last tile (the value that
    # persists in the revisited (2, H) output block).
    inv_n = jnp.float32(1.0 / n_real)
    mean = sum_ref[...] * inv_n
    var = jnp.maximum(sumsq_ref[...] * inv_n - mean * mean, 0.0)
    stats_ref[...] = jnp.concatenate([mean, var], axis=0)


def _bn_relu_linear_stats_kernel(z_ref, st_ref, g_ref, be_ref, w_ref, b_ref,
                                 out_ref, stats_ref, sum_ref, sumsq_ref,
                                 *, tile_m, n_real):
    """BN(full-batch stats) -> ReLU -> next fc; accumulates next layer's stats."""
    i = pl.program_id(0)

    @pl.when(i == 0)
    def _():
        sum_ref[...] = jnp.zeros_like(sum_ref)
        sumsq_ref[...] = jnp.zeros_like(sumsq_ref)

    z = z_ref[...]
    mean, var = st_ref[0:1, :], st_ref[1:2, :]
    h = (z - mean) * jax.lax.rsqrt(var + EPS) * g_ref[...] + be_ref[...]
    h = jnp.maximum(h, 0.0)

    z2 = jnp.dot(h.astype(jnp.bfloat16), w_ref[...],
                 preferred_element_type=jnp.float32) + b_ref[...]
    out_ref[...] = z2

    zm = jnp.where(_row_mask(tile_m, n_real), z2, 0.0)
    sum_ref[...] += jnp.sum(zm, axis=0, keepdims=True)
    sumsq_ref[...] += jnp.sum(zm * zm, axis=0, keepdims=True)

    inv_n = jnp.float32(1.0 / n_real)
    m2 = sum_ref[...] * inv_n
    v2 = jnp.maximum(sumsq_ref[...] * inv_n - m2 * m2, 0.0)
    stats_ref[...] = jnp.concatenate([m2, v2], axis=0)


def _bn_relu_linear_kernel(z_ref, st_ref, g_ref, be_ref, w_ref, b_ref, out_ref):
    """BN(full-batch stats) -> ReLU -> final fc (logits). Stateless across tiles."""
    z = z_ref[...]
    mean, var = st_ref[0:1, :], st_ref[1:2, :]
    h = (z - mean) * jax.lax.rsqrt(var + EPS) * g_ref[...] + be_ref[...]
    h = jnp.maximum(h, 0.0)
    out_ref[...] = jnp.dot(h.astype(jnp.bfloat16), w_ref[...],
                           preferred_element_type=jnp.float32) + b_ref[...]


# --------------------------------------------------------------------------- #
# pallas_call wrappers
# --------------------------------------------------------------------------- #
def _call_linear_stats(x, w, b, *, tile_m, n_real):
    n_pad, d_in = x.shape
    h = w.shape[1]
    grid = (n_pad // tile_m,)
    kernel = functools.partial(_linear_stats_kernel, tile_m=tile_m, n_real=n_real)
    cost = pl.CostEstimate(
        flops=2 * n_pad * d_in * h,
        transcendentals=0,
        bytes_accessed=n_pad * d_in * 4 + d_in * h * 2 + n_pad * h * 4 + 2 * h * 4)
    return pl.pallas_call(
        kernel,
        out_shape=(jax.ShapeDtypeStruct((n_pad, h), jnp.float32),
                   jax.ShapeDtypeStruct((2, h), jnp.float32)),
        grid_spec=pltpu.PrefetchScalarGridSpec(
            num_scalar_prefetch=0,
            grid=grid,
            in_specs=[
                pl.BlockSpec((tile_m, d_in), lambda i: (i, 0)),   # x tile
                pl.BlockSpec((d_in, h), lambda i: (0, 0)),        # W (resident)
                pl.BlockSpec((1, h), lambda i: (0, 0)),           # b (resident)
            ],
            out_specs=(
                pl.BlockSpec((tile_m, h), lambda i: (i, 0)),      # z tile
                pl.BlockSpec((2, h), lambda i: (0, 0)),           # mean/var (revisited)
            ),
            scratch_shapes=[pltpu.VMEM((1, h), jnp.float32),
                            pltpu.VMEM((1, h), jnp.float32)]),
        compiler_params=pltpu.CompilerParams(
            dimension_semantics=("arbitrary",),   # sequential stats accumulation
            vmem_limit_bytes=VMEM_LIMIT),
        cost_estimate=cost,
    )(x, w, b)


def _call_bn_relu_linear_stats(z, stats, g, be, w, b, *, tile_m, n_real):
    n_pad, d_in = z.shape
    h = w.shape[1]
    grid = (n_pad // tile_m,)
    kernel = functools.partial(_bn_relu_linear_stats_kernel,
                               tile_m=tile_m, n_real=n_real)
    cost = pl.CostEstimate(
        flops=2 * n_pad * d_in * h + 6 * n_pad * d_in,
        transcendentals=grid[0] * d_in,
        bytes_accessed=n_pad * d_in * 4 + d_in * h * 2 + n_pad * h * 4 + 2 * h * 4)
    return pl.pallas_call(
        kernel,
        out_shape=(jax.ShapeDtypeStruct((n_pad, h), jnp.float32),
                   jax.ShapeDtypeStruct((2, h), jnp.float32)),
        grid_spec=pltpu.PrefetchScalarGridSpec(
            num_scalar_prefetch=0,
            grid=grid,
            in_specs=[
                pl.BlockSpec((tile_m, d_in), lambda i: (i, 0)),   # z_prev tile
                pl.BlockSpec((2, d_in), lambda i: (0, 0)),        # prev-layer stats
                pl.BlockSpec((1, d_in), lambda i: (0, 0)),        # gamma
                pl.BlockSpec((1, d_in), lambda i: (0, 0)),        # beta
                pl.BlockSpec((d_in, h), lambda i: (0, 0)),        # W
                pl.BlockSpec((1, h), lambda i: (0, 0)),           # b
            ],
            out_specs=(
                pl.BlockSpec((tile_m, h), lambda i: (i, 0)),
                pl.BlockSpec((2, h), lambda i: (0, 0)),
            ),
            scratch_shapes=[pltpu.VMEM((1, h), jnp.float32),
                            pltpu.VMEM((1, h), jnp.float32)]),
        compiler_params=pltpu.CompilerParams(
            dimension_semantics=("arbitrary",),
            vmem_limit_bytes=VMEM_LIMIT),
        cost_estimate=cost,
    )(z, stats, g, be, w, b)


def _call_bn_relu_linear(z, stats, g, be, w, b, *, tile_m):
    n_pad, d_in = z.shape
    h = w.shape[1]
    grid = (n_pad // tile_m,)
    cost = pl.CostEstimate(
        flops=2 * n_pad * d_in * h + 6 * n_pad * d_in,
        transcendentals=grid[0] * d_in,
        bytes_accessed=n_pad * d_in * 4 + d_in * h * 2 + n_pad * h * 4)
    return pl.pallas_call(
        _bn_relu_linear_kernel,
        out_shape=jax.ShapeDtypeStruct((n_pad, h), jnp.float32),
        grid_spec=pltpu.PrefetchScalarGridSpec(
            num_scalar_prefetch=0,
            grid=grid,
            in_specs=[
                pl.BlockSpec((tile_m, d_in), lambda i: (i, 0)),
                pl.BlockSpec((2, d_in), lambda i: (0, 0)),
                pl.BlockSpec((1, d_in), lambda i: (0, 0)),
                pl.BlockSpec((1, d_in), lambda i: (0, 0)),
                pl.BlockSpec((d_in, h), lambda i: (0, 0)),
                pl.BlockSpec((1, h), lambda i: (0, 0)),
            ],
            out_specs=pl.BlockSpec((tile_m, h), lambda i: (i, 0))),
        compiler_params=pltpu.CompilerParams(
            dimension_semantics=("parallel",),    # no cross-tile state -> megacore OK
            vmem_limit_bytes=VMEM_LIMIT),
        cost_estimate=cost,
    )(z, stats, g, be, w, b)


# --------------------------------------------------------------------------- #
# Forward pass (wrapper)
# --------------------------------------------------------------------------- #
def lenet300_forward(x, params, *, tile_m=256):
    """Equivalent of LeNet300.forward (training-mode BatchNorm1d).

    x: (..., input_dim) float32.  params: dict in PyTorch layout (see init_params).
    Returns (N, output_dim) float32 logits.
    """
    d_in = params["w1"].shape[1]
    d_out = params["w3"].shape[0]
    x = x.reshape(-1, d_in)                      # mirrors x.view(-1, input_dim)
    n = x.shape[0]

    # lane/sublane-dense padded shapes
    d_in_p = _round_up(d_in, 128)
    h1_p = _round_up(H1, 128)                    # 300 -> 384
    h2_p = _round_up(H2, 128)                    # 100 -> 128
    d_out_p = _round_up(d_out, 128)

    tile_m = max(8, min(_round_up(tile_m, 8), _round_up(n, 8)))
    n_pad = _round_up(n, tile_m)

    def pad_w(w, rows, cols):                    # PyTorch (out,in) -> padded (in,out) bf16
        wt = w.T
        return jnp.pad(wt, ((0, rows - wt.shape[0]),
                            (0, cols - wt.shape[1]))).astype(jnp.bfloat16)

    def pad_row(v, cols):                        # (f,) -> (1, cols) f32, zero padded
        return jnp.pad(v, (0, cols - v.shape[0]))[None, :].astype(jnp.float32)

    xp = jnp.pad(x.astype(jnp.float32), ((0, n_pad - n), (0, d_in_p - d_in)))

    w1 = pad_w(params["w1"], d_in_p, h1_p)
    w2 = pad_w(params["w2"], h1_p, h2_p)
    w3 = pad_w(params["w3"], h2_p, d_out_p)
    b1 = pad_row(params["b1"], h1_p)
    b2 = pad_row(params["b2"], h2_p)
    b3 = pad_row(params["b3"], d_out_p)
    g1, be1 = pad_row(params["bn1_gamma"], h1_p), pad_row(params["bn1_beta"], h1_p)
    g2, be2 = pad_row(params["bn2_gamma"], h2_p), pad_row(params["bn2_beta"], h2_p)

    # layer 1: fc1 (+ full-batch stats of its pre-activations)
    z1, st1 = _call_linear_stats(xp, w1, b1, tile_m=tile_m, n_real=n)
    # layer 2: bn1 -> relu1 -> fc2 (+ stats)
    z2, st2 = _call_bn_relu_linear_stats(z1, st1, g1, be1, w2, b2,
                                         tile_m=tile_m, n_real=n)
    # layer 3: bn2 -> relu2 -> fc3 (logits)
    logits_p = _call_bn_relu_linear(z2, st2, g2, be2, w3, b3, tile_m=tile_m)
    return logits_p[:n, :d_out]


# --------------------------------------------------------------------------- #
# Parameters + pure-JAX references
# --------------------------------------------------------------------------- #
def init_params(key, input_dim, output_dim):
    """Deterministic synthetic params in PyTorch layout (nn.Linear: (out,in))."""
    ks = jax.random.split(key, 10)

    def lin(kw, kb, fan_out, fan_in):
        bound = 1.0 / (fan_in ** 0.5)
        w = jax.random.uniform(kw, (fan_out, fan_in), jnp.float32, -bound, bound)
        b = jax.random.uniform(kb, (fan_out,), jnp.float32, -bound, bound)
        return w, b

    w1, b1 = lin(ks[0], ks[1], H1, input_dim)
    w2, b2 = lin(ks[2], ks[3], H2, H1)
    w3, b3 = lin(ks[4], ks[5], output_dim, H2)
    return dict(
        w1=w1, b1=b1,
        bn1_gamma=1.0 + 0.1 * jax.random.normal(ks[6], (H1,), jnp.float32),
        bn1_beta=0.1 * jax.random.normal(ks[7], (H1,), jnp.float32),
        w2=w2, b2=b2,
        bn2_gamma=1.0 + 0.1 * jax.random.normal(ks[8], (H2,), jnp.float32),
        bn2_beta=0.1 * jax.random.normal(ks[9], (H2,), jnp.float32),
        w3=w3, b3=b3,
    )


def reference_forward_f32(x, p):
    """Pure-f32 mirror of the PyTorch module (training-mode BatchNorm1d)."""
    def bn_relu(h, g, b):
        mean = jnp.mean(h, axis=0, keepdims=True)
        var = jnp.mean((h - mean) ** 2, axis=0, keepdims=True)
        return jax.nn.relu((h - mean) / jnp.sqrt(var + EPS) * g + b)

    h1 = bn_relu(x @ p["w1"].T + p["b1"], p["bn1_gamma"], p["bn1_beta"])
    h2 = bn_relu(h1 @ p["w2"].T + p["b2"], p["bn2_gamma"], p["bn2_beta"])
    return h2 @ p["w3"].T + p["b3"]


def reference_forward_bf16(x, p):
    """Same forward with the kernel's numerics (bf16 MXU operands, f32 accum,
    single-pass variance, rsqrt) — used for the tight correctness check."""
    def mm(a, b):
        return jnp.dot(a.astype(jnp.bfloat16), b.astype(jnp.bfloat16),
                       preferred_element_type=jnp.float32)

    def bn_relu(h, g, b):
        mean = jnp.mean(h, axis=0, keepdims=True)
        var = jnp.maximum(jnp.mean(h * h, axis=0, keepdims=True) - mean * mean, 0.0)
        return jax.nn.relu((h - mean) * jax.lax.rsqrt(var + EPS) * g + b)

    h1 = bn_relu(mm(x, p["w1"].T) + p["b1"], p["bn1_gamma"], p["bn1_beta"])
    h2 = bn_relu(mm(h1, p["w2"].T) + p["b2"], p["bn2_gamma"], p["bn2_beta"])
    return mm(h2, p["w3"].T) + p["b3"]


if __name__ == "__main__":
    # Small shapes consistent with the module.  batch=50 is deliberately NOT a
    # multiple of the batch tile (16) so padded-row masking and the cross-tile
    # full-batch BatchNorm statistics path are both exercised (grid of 4 tiles).
    N, INPUT_DIM, OUTPUT_DIM = 50, 100, 10
    TILE_M = 16

    key = jax.random.PRNGKey(0)
    kx, kp = jax.random.split(key)
    x = jax.random.normal(kx, (N, INPUT_DIM), jnp.float32)
    params = init_params(kp, INPUT_DIM, OUTPUT_DIM)

    y = lenet300_forward(x, params, tile_m=TILE_M)
    y = jax.block_until_ready(y)
    assert y.shape == (N, OUTPUT_DIM)

    # Tight check vs a reference that uses the kernel's numerics.
    y_bf16 = reference_forward_bf16(x, params)
    err_tight = float(jnp.max(jnp.abs(y - y_bf16)))
    assert err_tight < 5e-3, f"mismatch vs bf16-matched reference: {err_tight}"

    # Loose check vs the pure-f32 PyTorch-equivalent reference (bf16 operand
    # rounding amplified through two BatchNorms -> O(1e-2) logit differences).
    y_f32 = reference_forward_f32(x, params)
    err_loose = float(jnp.max(jnp.abs(y - y_f32)))
    assert err_loose < 1.5e-1, f"mismatch vs f32 reference: {err_loose}"

    print("KERNEL_OK")
</pallas_src>

<mosaic_0001>
module attributes {stable_mosaic.version = 11 : i64} {
  func.func @_linear_stats_kernel(%arg0: i32, %arg1: memref<16x128xf32, #tpu.memory_space<vmem>>, %arg2: memref<128x384xbf16, #tpu.memory_space<vmem>>, %arg3: memref<1x384xf32, #tpu.memory_space<vmem>>, %arg4: memref<16x384xf32, #tpu.memory_space<vmem>>, %arg5: memref<2x384xf32, #tpu.memory_space<vmem>>, %arg6: memref<1x384xf32, #tpu.memory_space<vmem>>, %arg7: memref<1x384xf32, #tpu.memory_space<vmem>>) attributes {dimension_semantics = [#tpu.dimension_semantics<arbitrary>], iteration_bounds = array<i64: 4>, scalar_prefetch = 0 : i64, scratch_operands = 2 : i64, tpu.core_type = #tpu.core_type<tc>, window_params = [{transform_indices = @transform_0, window_bounds = array<i64: 16, 128>}, {pipeline_mode = #tpu.pipeline_mode<synchronous>, transform_indices = @transform_1, window_bounds = array<i64: 128, 384>}, {pipeline_mode = #tpu.pipeline_mode<synchronous>, transform_indices = @transform_2, window_bounds = array<i64: 1, 384>}, {transform_indices = @transform_3, window_bounds = array<i64: 16, 384>}, {pipeline_mode = #tpu.pipeline_mode<synchronous>, transform_indices = @transform_4, window_bounds = array<i64: 2, 384>}]} {
    %c0_i32 = arith.constant 0 : i32
    %0 = arith.cmpi eq, %arg0, %c0_i32 : i32
    %1 = arith.extui %0 : i1 to i32
    %c0_i32_0 = arith.constant 0 : i32
    %2 = arith.cmpi ne, %1, %c0_i32_0 : i32
    scf.if %2 {
      %cst_28 = arith.constant 0.000000e+00 : f32
      %44 = vector.broadcast %cst_28 : f32 to vector<1x384xf32>
      %c0_29 = arith.constant 0 : index
      %c0_30 = arith.constant 0 : index
      %45 = vector.load %arg6[%c0_29, %c0_30] : memref<1x384xf32, #tpu.memory_space<vmem>>, vector<1x384xf32>
      tpu.vector_store %arg6[%c0_29, %c0_30], %44 {strides = array<i32>} : memref<1x384xf32, #tpu.memory_space<vmem>>, vector<1x384xf32>,
      %cst_31 = arith.constant 0.000000e+00 : f32
      %46 = vector.broadcast %cst_31 : f32 to vector<1x384xf32>
      %c0_32 = arith.constant 0 : index
      %c0_33 = arith.constant 0 : index
      %47 = vector.load %arg7[%c0_32, %c0_33] : memref<1x384xf32, #tpu.memory_space<vmem>>, vector<1x384xf32>
      tpu.vector_store %arg7[%c0_32, %c0_33], %46 {strides = array<i32>} : memref<1x384xf32, #tpu.memory_space<vmem>>, vector<1x384xf32>,
    } else {
    }
    %c0 = arith.constant 0 : index
    %c0_1 = arith.constant 0 : index
    %3 = vector.load %arg1[%c0, %c0_1] : memref<16x128xf32, #tpu.memory_space<vmem>>, vector<16x128xf32>
    %4 = arith.truncf %3 : vector<16x128xf32> to vector<16x128xbf16>
    %c0_2 = arith.constant 0 : index
    %c0_3 = arith.constant 0 : index
    %5 = vector.load %arg2[%c0_2, %c0_3] : memref<128x384xbf16, #tpu.memory_space<vmem>>, vector<128x384xbf16>
    %cst = arith.constant dense<0.000000e+00> : vector<16x384xf32>
    %6 = tpu.matmul %4, %5, %cst {dimension_numbers = #tpu.dot_dimension_numbers<[1], [0], [0], [1], [0, 0, 1, 1], [], []>} : vector<16x128xbf16>, vector<128x384xbf16>, vector<16x384xf32> -> vector<16x384xf32>
    %c0_4 = arith.constant 0 : index
    %c0_5 = arith.constant 0 : index
    %7 = vector.load %arg3[%c0_4, %c0_5] : memref<1x384xf32, #tpu.memory_space<vmem>>, vector<1x384xf32>
    %8 = vector.broadcast %7 : vector<1x384xf32> to vector<16x384xf32>
    %9 = arith.addf %6, %8 : vector<16x384xf32>
    %c0_6 = arith.constant 0 : index
    %c0_7 = arith.constant 0 : index
    %10 = vector.load %arg4[%c0_6, %c0_7] : memref<16x384xf32, #tpu.memory_space<vmem>>, vector<16x384xf32>
    tpu.vector_store %arg4[%c0_6, %c0_7], %9 {strides = array<i32>} : memref<16x384xf32, #tpu.memory_space<vmem>>, vector<16x384xf32>,
    %c16_i32 = arith.constant 16 : i32
    %11 = arith.muli %arg0, %c16_i32 : i32
    %12 = tpu.iota {dimensions = array<i32: 0>} : vector<16x1xi32>
    %13 = vector.broadcast %11 : i32 to vector<16x1xi32>
    %14 = arith.addi %13, %12 : vector<16x1xi32>
    %c50_i32 = arith.constant 50 : i32
    %15 = vector.broadcast %c50_i32 : i32 to vector<16x1xi32>
    %16 = arith.cmpi slt, %14, %15 : vector<16x1xi32>
    %cst_8 = arith.constant 0.000000e+00 : f32
    %17 = vector.shape_cast %16 : vector<16x1xi1> to vector<16x1xi1>
    %18 = vector.broadcast %17 : vector<16x1xi1> to vector<16x384xi1>
    %19 = vector.broadcast %cst_8 : f32 to vector<16x384xf32>
    %20 = arith.select %18, %9, %19 : vector<16x384xi1>, vector<16x384xf32>
    %c0_9 = arith.constant 0 : index
    %c0_10 = arith.constant 0 : index
    %21 = vector.load %arg6[%c0_9, %c0_10] : memref<1x384xf32, #tpu.memory_space<vmem>>, vector<1x384xf32>
    %cst_11 = arith.constant dense<0.000000e+00> : vector<384xf32>
    %22 = vector.multi_reduction <add>, %20, %cst_11 [0] : vector<16x384xf32> to vector<384xf32>
    %23 = vector.shape_cast %22 : vector<384xf32> to vector<1x384xf32>
    %24 = arith.addf %21, %23 : vector<1x384xf32>
    %c0_12 = arith.constant 0 : index
    %c0_13 = arith.constant 0 : index
    %25 = vector.load %arg6[%c0_12, %c0_13] : memref<1x384xf32, #tpu.memory_space<vmem>>, vector<1x384xf32>
    tpu.vector_store %arg6[%c0_12, %c0_13], %24 {strides = array<i32>} : memref<1x384xf32, #tpu.memory_space<vmem>>, vector<1x384xf32>,
    %c0_14 = arith.constant 0 : index
    %c0_15 = arith.constant 0 : index
    %26 = vector.load %arg7[%c0_14, %c0_15] : memref<1x384xf32, #tpu.memory_space<vmem>>, vector<1x384xf32>
    %27 = arith.mulf %20, %20 : vector<16x384xf32>
    %cst_16 = arith.constant dense<0.000000e+00> : vector<384xf32>
    %28 = vector.multi_reduction <add>, %27, %cst_16 [0] : vector<16x384xf32> to vector<384xf32>
    %29 = vector.shape_cast %28 : vector<384xf32> to vector<1x384xf32>
    %30 = arith.addf %26, %29 : vector<1x384xf32>
    %c0_17 = arith.constant 0 : index
    %c0_18 = arith.constant 0 : index
    %31 = vector.load %arg7[%c0_17, %c0_18] : memref<1x384xf32, #tpu.memory_space<vmem>>, vector<1x384xf32>
    tpu.vector_store %arg7[%c0_17, %c0_18], %30 {strides = array<i32>} : memref<1x384xf32, #tpu.memory_space<vmem>>, vector<1x384xf32>,
    %c0_19 = arith.constant 0 : index
    %c0_20 = arith.constant 0 : index
    %32 = vector.load %arg6[%c0_19, %c0_20] : memref<1x384xf32, #tpu.memory_space<vmem>>, vector<1x384xf32>
    %cst_21 = arith.constant 2.000000e-02 : f32
    %33 = vector.broadcast %cst_21 : f32 to vector<1x384xf32>
    %34 = arith.mulf %32, %33 : vector<1x384xf32>
    %c0_22 = arith.constant 0 : index
    %c0_23 = arith.constant 0 : index
    %35 = vector.load %arg7[%c0_22, %c0_23] : memref<1x384xf32, #tpu.memory_space<vmem>>, vector<1x384xf32>
    %cst_24 = arith.constant 2.000000e-02 : f32
    %36 = vector.broadcast %cst_24 : f32 to vector<1x384xf32>
    %37 = arith.mulf %35, %36 : vector<1x384xf32>
    %38 = arith.mulf %34, %34 : vector<1x384xf32>
    %39 = arith.subf %37, %38 : vector<1x384xf32>
    %cst_25 = arith.constant 0.000000e+00 : f32
    %40 = vector.broadcast %cst_25 : f32 to vector<1x384xf32>
    %41 = arith.maximumf %39, %40 : vector<1x384xf32>
    %42 = tpu.concatenate %34, %41 in 0 : vector<1x384xf32>, vector<1x384xf32> -> vector<2x384xf32>
    %c0_26 = arith.constant 0 : index
    %c0_27 = arith.constant 0 : index
    %43 = vector.load %arg5[%c0_26, %c0_27] : memref<2x384xf32, #tpu.memory_space<vmem>>, vector<2x384xf32>
    tpu.vector_store %arg5[%c0_26, %c0_27], %42 {strides = array<i32>} : memref<2x384xf32, #tpu.memory_space<vmem>>, vector<2x384xf32>,
    return
  }
  func.func @transform_0(%arg0: i32) -> (i32, i32) {
    %c0_i32 = arith.constant 0 : i32
    %c0_i32_0 = arith.constant 0 : i32
    return %arg0, %c0_i32 : i32, i32
  }
  func.func @transform_1(%arg0: i32) -> (i32, i32) {
    %c0_i32 = arith.constant 0 : i32
    %c0_i32_0 = arith.constant 0 : i32
    %c0_i32_1 = arith.constant 0 : i32
    return %c0_i32, %c0_i32_0 : i32, i32
  }
  func.func @transform_2(%arg0: i32) -> (i32, i32) {
    %c0_i32 = arith.constant 0 : i32
    %c0_i32_0 = arith.constant 0 : i32
    %c0_i32_1 = arith.constant 0 : i32
    return %c0_i32, %c0_i32_0 : i32, i32
  }
  func.func @transform_3(%arg0: i32) -> (i32, i32) {
    %c0_i32 = arith.constant 0 : i32
    %c0_i32_0 = arith.constant 0 : i32
    return %arg0, %c0_i32 : i32, i32
  }
  func.func @transform_4(%arg0: i32) -> (i32, i32) {
    %c0_i32 = arith.constant 0 : i32
    %c0_i32_0 = arith.constant 0 : i32
    %c0_i32_1 = arith.constant 0 : i32
    return %c0_i32, %c0_i32_0 : i32, i32
  }
}

</mosaic_0001>

<bundles_post_ra>
// kernel: tpu_custom_call.1
= control target key start
LH: loop header
LB: loop body
LE: loop exit
PB: predicated region body
PF: predicated region fallthrough
CT: control target
= control target key end

     0   :  { %10 = vsyncpa [#allocation5], 0  ;;  %s1443_s0 = inlined_call_operand.hbm [shape: f32[64,128], index: 0, kind: input, shape index: {}]   ;;  %s1444_s1 = inlined_call_operand.hbm [shape: bf16[128,384], index: 1, kind: input, shape index: {}]   ;;  %s1445_s2 = inlined_call_operand.vmem [shape: f32[1,384], index: 2, kind: input, shape index: {}]   ;;  %s1446_s3 = inlined_call_operand.hbm [shape: f32[64,384], index: 3, kind: output, shape index: {0}]   ;;  %s1447_s4 = inlined_call_operand.hbm [shape: f32[2,384], index: 4, kind: output, shape index: {1}]  }
   0x1   :  { %12 = vsyncpa [#allocation5 + $0x1], 0 }
   0x2   :  { %13 = vsyncpa [#allocation8], 0 }
   0x3   :  { %14 = vsyncpa [#allocation6], 0 }
   0x4   :  { %16 = vsyncpa [#allocation6 + $0x1], 0 }
   0x5   :  { %17 = vsyncpa [#allocation11], 0  ;;  %s1204_s15 = smov 0   ;;  %s1206_s16 = smov 0  }
   0x6   :  { %s1208_s17 = smov 0   ;;  %s1210_s18 = smov 0  }
   0x7 LB: > { %s1225_s19 = sadd.s32 4294967295, %s1161_s18   ;;  %s828_s20 = sadd.s32 4294967294, %s1161_s18   ;;  %s1161_s18 = sphi %s1210_s18, %s1473_s18   ;;  %s1157_s17 = sphi %s1208_s17, %s1472_s17   ;;  %s1153_s16 = sphi %s1206_s16, %s1471_s16   ;;  %s1149_s15 = sphi %s1204_s15, %s1470_s15  }
   0x8   : > { %p43_p0 = scmp.ne.s32.totalorder %s1153_s16, %s1149_s15  ;;  %p1448_p1 = scmp.eq.s32.totalorder %s1225_s19, 0 }
   0x9   : > { %p115_p3 = scmp.eq.s32.totalorder %s828_s20, 3  ;;  %p829_p5 = scmp.ge.s32.totalorder %s1161_s18, 1 }
   0xa   : > { %p1234_p4 = por %p1448_p1, %p43_p0  ;;  %p143_p7 = scmp.lt.s32.totalorder %s1161_s18, 5 }
   0xb   : > { %p1239_p6 = por %p115_p3, %p43_p0  ;;  %s1163_s24 = smov [#allocation7]  }
   0xc   : > { %s1452_s21 = scalar_select %p1234_p4, 1, 0 }
   0xd   : > { %s1453_s22 = scalar_select %p1239_p6, 1, 0 }
   0xe   : > { %p1245_p9 = pnand %p829_p5, %p143_p7  ;;  %s155_s25 = sshll.u32 %s1163_s24, 4  ;;  %s156_s25 = int_to_ptr.vmem [resolvable:$true] %s155_s25 }
   0xf   : > { %s1258_s27 = sadd.s32 1, %s1161_s18   ;;  %s30_s28 = sadd.s32 1, %s1157_s17 }
  0x10   : > { %s1454_s23 = scalar_select %p1245_p9, 1, 0 }
  0x11   : > { %p915_p10 = pneg %p1245_p9  ;;  %s27_s29 = ssub.s32 %s1161_s18, %s1258_s27 }
  0x12   : > { %s1022_s30 = scalar_lea.vmem %s156_s25, 3072  ;;  %p1030_p5 = scmp.lt.s32.totalorder %s156_s25, %s156_s25 }
  0x13   : > { %p1253_p11 = pnand %p915_p10, %p1448_p1  ;;  %p1023_p13 = scmp.ne.s32.totalorder %s156_s25, %s1022_s30 }
  0x14   : > { %p1031_p7 = scmp.lt.s32.totalorder %s1022_s30, %s1022_s30 }
  0x15   : > { %p1013_p12 = pneg %p1253_p11 }
  0x16   : > { %p1032_p8 = por %p1031_p7, %p1030_p5 }
  0x17   : > { %p1025_p0 = pnand %p1023_p13, %p1013_p12 }
  0x19   : > { %p1026_p3 = pneg %p1025_p0 }
  0x1b   : > { %p1033_p2 = pnand %p1032_p8, %p1026_p3 }
  0x1d   : > { %1036 = shalt.err (!%p1033_p2)
}
  0x1e   : > { %s1164_s5 = smov 192   ;;  %s1165_s6 = smov 12  }
  0x1f   : > { %918 = dma.hbm_to_vmem [thread:$0]  (!%p1253_p11), %s1444_s1, 3072, %s156_s25, [#allocation8], %s1164_s5, %s1164_s5, %s1165_s6  }
  0x20   : > { %p28_p10 = scmp.eq.s32.totalorder %s27_s29, 0  ;;  %p37_p12 = scmp.ne.s32.totalorder %s1157_s17, %s1153_s16 }
  0x21   : > { %p38_p8 = scmp.eq.s32.totalorder %s1161_s18, 0  ;;  %p928_p2 = scmp.lt.s32.totalorder %s1161_s18, 4 }
  0x22   : > { %s1275_s9 = scalar_select %p28_p10, %s1157_s17, %s30_s28  }
  0x23   : > { %p39_p13 = por %p38_p8, %p37_p12  ;;  %p1456_p0 = scmp.eq.s32.totalorder %s1225_s19, 3 }
  0x24   : > { %s172_s11 = sand.u32 1, %s1157_s17   ;;  %s871_s12 = sshll.u32 %s1161_s18, 8 }
  0x25   : > { %p1279_p3 = por %p1456_p0, %p37_p12  ;;  %s832_s13 = sshll.u32 %s172_s11, 4 }
  0x26   : > { %s1288_s24 = scalar_lea.hbm %s1443_s0, %s871_s12  ;;  %s176_s25 = scalar_lea.vmem [#allocation4], %s832_s13 }
  0x27   : > { %s1457_s10 = scalar_select %p1279_p3, 1, 0 }
  0x28   : > { %s183_s26 = sshll.u32 %s176_s25, 4  ;;  %p1290_p11 = pnand %p928_p2, %p39_p13  ;;  %s1294_s26 = int_to_ptr.vmem [resolvable:$true] %s183_s26 }
  0x29   : > { %s1296_s29 = scalar_lea.sflag [#allocation5], %s172_s11  ;;  %s1037_s30 = scalar_lea.hbm %s1288_s24, 256 }
  0x2a   : > { %p1038_p5 = scmp.ne.s32.totalorder %s1288_s24, %s1037_s30  ;;  %p1039_p7 = pneg %p1290_p11 }
  0x2b   : > { %s1042_s7 = scalar_lea.hbm %s1443_s0, 1024  ;;  %p1043_p8 = scmp.lt.s32.totalorder %s1288_s24, %s1443_s0 }
  0x2c   : > { %p1040_p10 = pnand %p1039_p7, %p1038_p5  ;;  %p1044_p2 = scmp.lt.s32.totalorder %s1042_s7, %s1037_s30 }
  0x2e   : > { %p1041_p12 = pneg %p1040_p10  ;;  %p1045_p13 = por %p1044_p2, %p1043_p8 }
  0x30   : > { %p1046_p0 = pnand %p1045_p13, %p1041_p12 }
  0x32   : > { %1049 = shalt.err (!%p1046_p0)
}
  0x33   : > { %s1050_s11 = scalar_lea.vmem %s1294_s26, 256  ;;  %s1166_s13 = smov [#allocation4]  }
  0x34   : > { %p1051_p1 = scmp.ne.s32.totalorder %s1294_s26, %s1050_s11  ;;  %s1055_s14 = sshll.u32 %s1166_s13, 4  ;;  %s1056_s14 = int_to_ptr.vmem [resolvable:$false] %s1055_s14 }
  0x35   : > { %s1057_s20 = scalar_lea.vmem %s1056_s14, 512  ;;  %p1058_p10 = scmp.lt.s32.totalorder %s1294_s26, %s1056_s14 }
  0x36   : > { %p1053_p6 = pnand %p1051_p1, %p1039_p7  ;;  %p1059_p3 = scmp.lt.s32.totalorder %s1057_s20, %s1050_s11 }
  0x38   : > { %p1054_p5 = pneg %p1053_p6  ;;  %p1060_p4 = por %p1059_p3, %p1058_p10 }
  0x3a   : > { %p1061_p9 = pnand %p1060_p4, %p1054_p5 }
  0x3c   : > { %1064 = shalt.err (!%p1061_p9)
}
  0x3d   : > { %s1167_s25 = smov 128   ;;  %s1168_s30 = smov 8  }
  0x3e   : > { %922 = dma.hbm_to_vmem [thread:$0]  (!%p1290_p11), %s1288_s24, 256, %s1294_s26, %s1296_s29, %s1167_s25, %s1167_s25, %s1168_s30  }
  0x3f   : > { %p1459_p1 = scmp.ne.s32.totalorder %s1454_s23, 0 }
  0x40   : > { %s1320_s5 = sand.u32 (!%p1459_p1), 1, %s1153_s16   ;;  %p1460_p4 = scmp.ne.s32.totalorder (!%p1459_p1), %s1452_s21, 0 }
  0x41   : > { %195 = sbr.rel (%p1459_p1) target bundleno = 390 (0x186), region = 32  ;;  %s836_s6 = sshll.u32 (!%p1459_p1), %s1320_s5, 4 }
  0x42   : > { %s198_s7 = scalar_lea.sflag (!%p1459_p1), [#allocation5], %s1320_s5  ;;  %s1324_s8 = scalar_lea.vmem (!%p1459_p1), [#allocation4], %s836_s6 }
  0x46   : > { %1132 = dma.done.wait (%p1460_p4), %s198_s7, 256  }
  0x47   : > { %1134 = vsyncadd (%p1460_p4), %s198_s7, 4294967040  ;;  %p1461_p6 = scmp.eq.s32.totalorder %s1225_s19, 0 }
  0x49   : > { %1136 = dma.done.wait (%p1461_p6), [#allocation8], 3072   ;;  %p1462_p9 = pmov %p1461_p6 }
  0x4a   : > { %s901_s23 = smul.u32 48, %s1320_s5  ;;  %p1463_p3 = scmp.ne.s32.totalorder %s1225_s19, 0 }
  0x4b   : > { %1138 = vsyncadd (%p1462_p9), [#allocation8], 4294964224 }
  0x4c   : > { %s1335_s24 = scalar_lea.vmem [#allocation9], %s901_s23  ;;  %236 = sbr.rel (%p1463_p3) target bundleno = 85 (0x55), region = 44 }
  0x51   : > { %v237_v0 = vlaneseq  ;;  %v1169_v1 = vmov 0.0  }
  0x53   : > { %vm239_vm0 = vcmp.lt.s32.totalorder %v237_v0, 384 }
  0x54   : > { %241 = vst.msk [vmem:[#allocation2] sm:$0x7] %vm239_vm0, %v1169_v1  ;;  %242 = vst.msk [vmem:[#allocation3] sm:$0x7] %vm239_vm0, %v1169_v1 }
  0x55 PF: > { %v979_v2 = vld [vmem:[#allocation7 + $0xac] ss:$12 sps:$4 sm:$0xff]   ;;  %v1170_v3 = vmov 0.0   ;;  %v981_v4 = vld [vmem:[#allocation7 + $0xb0] ss:$12 sps:$4 sm:$0xff]   ;;  %vm1171_vm1 = vmmov 0   ;;  %v280_v31 = vlaneseq }
  0x56   : > { %881 = vmatprep.subr.bf16.mxu1 %v1170_v3  ;;  %897 = vmatprep.mubr.msk.bf16.mxu1 %vm1171_vm1, %v1170_v3  ;;  %v982_v5 = vld [vmem:[#allocation7 + $0xa8] ss:$12 sps:$4 sm:$0xff]   ;;  %v1172_v7 = vmov 0   ;;  %v985_v8 = vld [vmem:[#allocation7 + $0x98] ss:$12 sps:$4 sm:$0xff]   ;;  %s863_s21 = sshll.u32 %s1225_s19, 4 }
  0x57   : > { %423 = vmatprep.subr.bf16.mxu0 %v979_v2  ;;  %882 = vmatpush3.bf16.msra.mxu1 %v981_v4  ;;  %v983_v6 = vld [vmem:[#allocation7 + $0x94] ss:$12 sps:$4 sm:$0xff]   ;;  %v986_v9 = vld [vmem:[#allocation7 + $0x90] ss:$12 sps:$4 sm:$0xff]   ;;  %v990_v12 = vld [vmem:[#allocation7 + $0x78] ss:$12 sps:$4 sm:$0xff]   ;;  %v517_v36 = vstv %s863_s21 }
  0x58   : > { %455 = vmatprep.mubr.bf16.mxu0 %v1172_v7  ;;  %424 = vmatpush1.bf16.msra.mxu0 %v982_v5  ;;  %v987_v10 = vld [vmem:[#allocation7 + $0x7c] ss:$12 sps:$4 sm:$0xff]   ;;  %v989_v11 = vld [vmem:[#allocation7 + $0x80] ss:$12 sps:$4 sm:$0xff]   ;;  %v991_v13 = vld [vmem:[#allocation7 + $0x64] ss:$12 sps:$4 sm:$0xff]  }
  0x59   : > { %883 = vmatprep.subr.bf16.mxu1 %v1170_v3  ;;  %425 = vmatprep.subr.bf16.mxu0 %v983_v6  ;;  %v993_v14 = vld [vmem:[#allocation7 + $0x68] ss:$12 sps:$4 sm:$0xff]   ;;  %v994_v15 = vld [vmem:[#allocation7 + $0x60] ss:$12 sps:$4 sm:$0xff]   ;;  %v997_v17 = vld [vmem:[#allocation7 + $0x50] ss:$12 sps:$4 sm:$0xff]  }
  0x5a   : > { %v995_v16 = vld [vmem:[#allocation7 + $0x4c] ss:$12 sps:$4 sm:$0xff]   ;;  %v998_v18 = vld [vmem:[#allocation7 + $0x48] ss:$12 sps:$4 sm:$0xff]   ;;  %v1002_v21 = vld [vmem:[#allocation7 + $0x30] ss:$12 sps:$4 sm:$0xff]  }
  0x5b   : > { %884 = vmatpush3.bf16.msra.mxu1 %v985_v8  ;;  %v999_v19 = vld [vmem:[#allocation7 + $0x34] ss:$12 sps:$4 sm:$0xff]   ;;  %v1001_v20 = vld [vmem:[#allocation7 + $0x38] ss:$12 sps:$4 sm:$0xff]   ;;  %v1003_v22 = vld [vmem:[#allocation7 + $0x1c] ss:$12 sps:$4 sm:$0xff]  }
  0x5c   : > { %426 = vmatpush1.bf16.msra.mxu0 %v986_v9  ;;  %885 = vmatprep.subr.bf16.mxu1 %v1170_v3  ;;  %v1005_v23 = vld [vmem:[#allocation7 + $0x20] ss:$12 sps:$4 sm:$0xff]   ;;  %v1006_v24 = vld [vmem:[#allocation7 + $0x18] ss:$12 sps:$4 sm:$0xff]   ;;  %v1009_v26 = vld [vmem:[#allocation7 + $0x8] ss:$12 sps:$4 sm:$0xff]  }
  0x5d   : > { %427 = vmatprep.subr.bf16.mxu0 %v987_v10  ;;  %v1007_v25 = vld [vmem:[#allocation7 + $0x4] ss:$12 sps:$4 sm:$0xff]   ;;  %v244_v28 = vld [vmem:[%s1324_s8 + $0x8] sm:$0xff]  ;;  %v1342_v32 = vshrl.u32 %v280_v31, 7  ;;  %s902_s29 = smul.u32 768, %s1225_s19  ;;  %s723_s12 = sshll.u32 %s1335_s24, 4  ;;  %s1379_s12 = int_to_ptr.vmem [resolvable:$true] %s723_s12 }
  0x5e   : > { %v243_v27 = vld [vmem:[%s1324_s8] sm:$0xff]  ;;  %v278_v35 = vld [vmem:[%s1445_s2] sm:$0x7]  ;;  %s709_s20 = scalar_lea.sflag [#allocation6], %s1320_s5  ;;  %s1065_s25 = scalar_lea.vmem %s1379_s12, 768 }
  0x5f   : > { %886 = vmatpush3.bf16.msra.mxu1 %v989_v11  ;;  %v1010_v29 = vld [vmem:[#allocation7] ss:$12 sps:$4 sm:$0xff]   ;;  %v245_v30 = vpack.c.bf16 %v244_v28, %v243_v27  ;;  %v1346_v33 = vsub.s32 2, %v1342_v32  ;;  %v1349_v34 = vsub.s32 0, %v1342_v32  ;;  %v1355_v37 = vsub.s32 1, %v1342_v32  ;;  %s1375_s14 = scalar_lea.hbm %s1446_s3, %s902_s29  ;;  %p1066_p11 = scmp.ne.s32.totalorder %s1379_s12, %s1065_s25 }
  0x60   : > { %428 = vmatpush1.bf16.msra.mxu0 %v990_v12  ;;  %887 = vmatprep.subr.bf16.mxu1 %v1170_v3  ;;  %v516_v38 = vadd.s32 8, %v1342_v32  ;;  %v518_v40 = vadd.s32 %v517_v36, %v1342_v32  ;;  %p1464_p7 = scmp.ne.s32.totalorder %s1457_s10, 0  ;;  %s1173_s30 = smov [#allocation9]  }
  0x61   : > { %429 = vmatprep.subr.bf16.mxu0 %v991_v13  ;;  %v291_v39 = vrot.slane %v278_v35, %v1346_v33  ;;  %v283_v41 = vrot.slane %v278_v35, %v1349_v34  ;;  %v287_v43 = vrot.slane %v278_v35, %v1355_v37  ;;  %s1069_s6 = sshll.u32 %s1173_s30, 4  ;;  %s1070_s6 = int_to_ptr.vmem [resolvable:$false] %s1069_s6 }
  0x62   : > { %v519_v44 = vadd.s32 %v517_v36, %v516_v38  ;;  %vm520_vm2 = vcmp.lt.s32.totalorder %v518_v40, 50  ;;  %p1067_p12 = pnand %p1066_p11, %p1464_p7  ;;  %s1071_s7 = scalar_lea.vmem %s1070_s6, 1536 }
  0x63   : > { %888 = vmatpush3.bf16.msra.mxu1 %v993_v14  ;;  %p1072_p2 = scmp.lt.s32.totalorder %s1379_s12, %s1070_s6  ;;  %p1073_p13 = scmp.lt.s32.totalorder %s1071_s7, %s1065_s25 }
  0x64   : > { %430 = vmatpush1.bf16.msra.mxu0 %v994_v15  ;;  %889 = vmatprep.subr.bf16.mxu1 %v1170_v3  ;;  %vm521_vm3 = vcmp.lt.s32.totalorder %v519_v44, 50  ;;  %p1068_p8 = pneg %p1067_p12 }
  0x65   : > { %431 = vmatprep.subr.bf16.mxu0 %v995_v16  ;;  %p1074_p0 = por %p1073_p13, %p1072_p2 }
  0x67   : > { %890 = vmatpush3.bf16.msra.mxu1 %v997_v17  ;;  %p1075_p5 = pnand %p1074_p0, %p1068_p8 }
  0x68   : > { %432 = vmatpush1.bf16.msra.mxu0 %v998_v18  ;;  %891 = vmatprep.subr.bf16.mxu1 %v1170_v3 }
  0x69   : > { %433 = vmatprep.subr.bf16.mxu0 %v999_v19 }
  0x6b   : > { %892 = vmatpush3.bf16.msra.mxu1 %v1001_v20 }
  0x6c   : > { %434 = vmatpush1.bf16.msra.mxu0 %v1002_v21  ;;  %893 = vmatprep.subr.bf16.mxu1 %v1170_v3 }
  0x6d   : > { %435 = vmatprep.subr.bf16.mxu0 %v1003_v22 }
  0x6f   : > { %894 = vmatpush3.bf16.msra.mxu1 %v1005_v23 }
  0x70   : > { %436 = vmatpush1.bf16.msra.mxu0 %v1006_v24  ;;  %895 = vmatprep.subr.bf16.mxu1 %v1170_v3 }
  0x71   : > { %437 = vmatprep.subr.bf16.mxu0 %v1007_v25 }
  0x73   : > { %896 = vmatpush3.bf16.msra.mxu1 %v1009_v26 }
  0x74   : > { %438 = vmatpush1.bf16.msra.mxu0 %v1010_v29 }
  0x76   : > { %898 = vmatmul.mubr.bf16.vlgmr.msra.gmra.mxu1 %v245_v30 }
  0x77   : > { %456 = vmatmul.mubr.bf16.vlgmr.msra.gmra.mxu0 %v245_v30 }
 0x136   : > { %v500_v42 = vpop.f32.mrf.mxu1 }
 0x137   : > { %v501_v45 = vadd.f32 %v500_v42, %v291_v39  ;;  %v457_v46 = vpop.f32.mrf.mxu0 }
 0x138   : > { %v458_v47 = vadd.f32 %v457_v46, %v283_v41  ;;  %v899_v48 = vpop.f32.mrf.mxu1 }
 0x139   : > { %509 = vst [vmem:[%s1335_s24 + $0x10] sm:$0xff] %v501_v45  ;;  %v528_v49 = vsel %vm520_vm2, %v501_v45, 0.0  ;;  %v459_v50 = vpop.f32.mrf.mxu0 }
 0x13a   : > { %507 = vst [vmem:[%s1335_s24] sm:$0xff] %v458_v47  ;;  %v460_v51 = vadd.f32 %v459_v50, %v287_v43  ;;  %v503_v52 = vpop.f32.mrf.mxu1  ;;  %v590_v55 = vmul.f32 %v528_v49, %v528_v49  ;;  %v526_v56 = vsel %vm520_vm2, %v458_v47, 0.0 }
 0x13b   : > { %v504_v53 = vadd.f32 %v503_v52, %v291_v39  ;;  %v461_v54 = vpop.f32.mrf.mxu0  ;;  %v588_v2 = vmul.f32 %v526_v56, %v526_v56 }
 0x13c   : > { %508 = vst [vmem:[%s1335_s24 + $0x8] sm:$0xff] %v460_v51  ;;  %v462_v57 = vadd.f32 %v461_v54, %v283_v41  ;;  %v900_v58 = vpop.f32.mrf.mxu1  ;;  %v527_v59 = vsel %vm520_vm2, %v460_v51, 0.0 }
 0x13d   : > { %512 = vst [vmem:[%s1335_s24 + $0x28] sm:$0xff] %v504_v53  ;;  %v531_v60 = vsel %vm521_vm3, %v504_v53, 0.0  ;;  %v463_v61 = vpop.f32.mrf.mxu0  ;;  %v589_v5 = vmul.f32 %v527_v59, %v527_v59 }
 0x13e   : > { %v547_v62 = vadd.f32 %v531_v60, %v528_v49  ;;  %v593_v63 = vmul.f32 %v531_v60, %v531_v60  ;;  %510 = vst [vmem:[%s1335_s24 + $0x18] sm:$0xff] %v462_v57  ;;  %v529_v0 = vsel %vm521_vm3, %v462_v57, 0.0  ;;  %v464_v1 = vadd.f32 %v463_v61, %v287_v43 }
 0x13f   : > { %v533_v3 = vadd.f32 %v529_v0, %v526_v56  ;;  %v591_v4 = vmul.f32 %v529_v0, %v529_v0 }
 0x140   : > { %v548_v6 = vrot.slane %v547_v62, 4  ;;  %v608_v7 = vadd.f32 %v593_v63, %v590_v55  ;;  %511 = vst [vmem:[%s1335_s24 + $0x20] sm:$0xff] %v464_v1  ;;  %v530_v8 = vsel %vm521_vm3, %v464_v1, 0.0 }
 0x141   : > { %v534_v9 = vrot.slane %v533_v3, 4  ;;  %v594_v10 = vadd.f32 %v591_v4, %v588_v2  ;;  %v540_v11 = vadd.f32 %v530_v8, %v527_v59  ;;  %v592_v12 = vmul.f32 %v530_v8, %v530_v8 }
 0x142   : > { %1078 = shalt.err (!%p1075_p5)
}
 0x143   : > { %s1079_s8 = scalar_lea.hbm %s1375_s14, 768  ;;  %s1083_s21 = scalar_lea.hbm %s1446_s3, 3072 }
 0x144   : > { %p1080_p10 = scmp.ne.s32.totalorder %s1375_s14, %s1079_s8  ;;  %p1084_p6 = scmp.lt.s32.totalorder %s1375_s14, %s1446_s3 }
 0x145   : > { %p1085_p9 = scmp.lt.s32.totalorder %s1083_s21, %s1079_s8 }
 0x146   : > { %p1081_p1 = pnand %p1080_p10, %p1464_p7 }
 0x147   : > { %p1086_p3 = por %p1085_p9, %p1084_p6 }
 0x148   : > { %p1082_p4 = pneg %p1081_p1 }
 0x14a   : > { %p1087_p11 = pnand %p1086_p3, %p1082_p4 }
 0x14c   : > { %1090 = shalt.err (!%p1087_p11)
}
 0x14d   : > { %s1174_s29 = smov 384   ;;  %s1175_s11 = smov 24   ;;  %v549_v13 = vadd.f32 %v548_v6, %v547_v62  ;;  %v609_v14 = vrot.slane %v608_v7, 4  ;;  %v535_v15 = vadd.f32 %v534_v9, %v533_v3  ;;  %v595_v16 = vrot.slane %v594_v10, 4  ;;  %v532_v0 = vld [vmem:[#allocation2] sm:$0x7] }
 0x14e   : > { %909 = dma.vmem_to_hbm [thread:$0]  (%p1464_p7), %s1379_s12, 768, %s1375_s14, %s709_s20, %s1174_s29, %s1174_s29, %s1175_s11   ;;  %v541_v17 = vrot.slane %v540_v11, 4  ;;  %v601_v18 = vadd.f32 %v592_v12, %v589_v5  ;;  %v1176_v20 = vmov 1966171168   ;;  %vm584_vm4 = vcmp.lt.s32.totalorder %v280_v31, 384 }
 0x14f   : > { %v550_v19 = vrot.slane %v549_v13, 2  ;;  %v559_v21 = vunpack.c.l.s4 %v1176_v20  ;;  %v610_v22 = vadd.f32 %v609_v14, %v608_v7  ;;  %v536_v23 = vrot.slane %v535_v15, 2  ;;  %v587_v3 = vld [vmem:[#allocation3] sm:$0x7]  ;;  %s1178_s10 = smov [#allocation10]   ;;  %p1465_p12 = scmp.eq.s32.totalorder %s1225_s19, 3 }
 0x150   : > { %v596_v24 = vadd.f32 %v595_v16, %v594_v10  ;;  %v542_v25 = vadd.f32 %v541_v17, %v540_v11  ;;  %v602_v26 = vrot.slane %v601_v18, 4  ;;  %v1177_v10 = vmov 1983009808   ;;  %s737_s5 = sshll.u32 %s1178_s10, 4  ;;  %s738_s5 = int_to_ptr.vmem [resolvable:$true] %s737_s5 }
 0x151   : > { %v551_v27 = vadd.f32 %v550_v19, %v549_v13  ;;  %v611_v28 = vrot.slane %v610_v22, 2  ;;  %v537_v29 = vadd.f32 %v536_v23, %v535_v15  ;;  %v560_v39 = vunpack.c.0.s8 %v559_v21  ;;  %s1091_s12 = scalar_lea.vmem %s738_s5, 96  ;;  %p1098_p13 = scmp.lt.s32.totalorder %s738_s5, %s738_s5 }
 0x152   : > { %v597_v30 = vrot.slane %v596_v24, 2  ;;  %v543_v35 = vrot.slane %v542_v25, 2  ;;  %v603_v36 = vadd.f32 %v602_v26, %v601_v18  ;;  %v692_v11 = vunpack.c.l.s4 %v1177_v10  ;;  %p1092_p7 = scmp.ne.s32.totalorder %s738_s5, %s1091_s12  ;;  %p1099_p0 = scmp.lt.s32.totalorder %s1091_s12, %s1091_s12 }
 0x153   : > { %v552_v38 = vrot.slane %v551_v27, 1  ;;  %v612_v40 = vadd.f32 %v611_v28, %v610_v22  ;;  %v538_v41 = vrot.slane %v537_v29, 1  ;;  %v563_v49 = vsub.s32 %v560_v39, %v1342_v32 }
 0x154   : > { %v598_v42 = vadd.f32 %v597_v30, %v596_v24  ;;  %v544_v43 = vadd.f32 %v543_v35, %v542_v25  ;;  %v604_v44 = vrot.slane %v603_v36, 2  ;;  %v693_v15 = vunpack.c.0.s8 %v692_v11  ;;  %p1093_p8 = pnand %p1092_p7, %p1465_p12  ;;  %p1100_p5 = por %p1099_p0, %p1098_p13 }
 0x155   : > { %v613_v45 = vrot.slane %v612_v40, 1  ;;  %v553_v50 = vadd.f32 %v552_v38, %v551_v27  ;;  %v539_v51 = vadd.f32 %v538_v41, %v537_v29  ;;  %vm683_vm5 = vcmask 1040384  }
 0x156   : > { %v599_v46 = vrot.slane %v598_v42, 1  ;;  %v545_v47 = vrot.slane %v544_v43, 1  ;;  %v605_v48 = vadd.f32 %v604_v44, %v603_v36  ;;  %v696_v22 = vsub.s32 %v693_v15, %v1342_v32  ;;  %p1094_p2 = pneg %p1093_p8 }
 0x157   : > { %v614_v54 = vadd.f32 %v613_v45, %v612_v40  ;;  %v571_v58 = vrot.slane %v553_v50, %v563_v49 }
 0x158   : > { %v546_v52 = vadd.f32 %v545_v47, %v544_v43  ;;  %v606_v53 = vrot.slane %v605_v48, 1  ;;  %v600_v55 = vadd.f32 %v599_v46, %v598_v42  ;;  %p1101_p10 = pnand %p1100_p5, %p1094_p2 }
 0x159   : > { %v632_v61 = vrot.slane %v614_v54, %v563_v49 }
 0x15a   : > { %v557_v56 = vcombine.low %v539_v51, %v546_v52  ;;  %v607_v57 = vadd.f32 %v606_v53, %v605_v48 }
 0x15c   : > { %v564_v59 = vrot.slane %v557_v56, %v563_v49  ;;  %v618_v60 = vcombine.low %v600_v55, %v607_v57 }
 0x15e   : > { %v572_v62 = vcombine.low %v564_v59, %v571_v58  ;;  %v625_v63 = vrot.slane %v618_v60, %v563_v49 }
 0x160   : > { %v579_v1 = vrot.slane %v572_v62, %v563_v49  ;;  %v633_v2 = vcombine.low %v625_v63, %v632_v61 }
 0x162   : > { %v581_v4 = vadd.f32 %v579_v1, %v532_v0  ;;  %v640_v5 = vrot.slane %v633_v2, %v563_v49 }
 0x164   : > { %586 = vst.msk [vmem:[#allocation2] sm:$0x7] %vm584_vm4, %v581_v4  ;;  %v642_v6 = vadd.f32 %v640_v5, %v587_v3 }
 0x166   : > { %643 = vst.msk [vmem:[#allocation3] sm:$0x7] %vm584_vm4, %v642_v6 }
 0x16b   : > { %v644_v7 = vld [vmem:[#allocation2] sm:$0x7] }
 0x16c   : > { %v645_v8 = vmul.f32 0.02, %v644_v7 }
 0x16d   : > { %v646_v9 = vld [vmem:[#allocation3] sm:$0x7] }
 0x16e   : > { %v647_v12 = vmul.f32 0.02, %v646_v9  ;;  %v648_v13 = vmul.f32 %v645_v8, %v645_v8  ;;  %v655_v17 = vrot.slane %v645_v8, %v1349_v34  ;;  %v659_v31 = vrot.slane %v645_v8, %v1355_v37 }
 0x16f   : > { %v663_v18 = vrot.slane %v645_v8, %v1346_v33 }
 0x170   : > { %v649_v14 = vsub.f32 %v647_v12, %v648_v13 }
 0x172   : > { %v650_v16 = vmax.f32 %v649_v14, 0.0 }
 0x174   : > { %v671_v19 = vrot.slane %v650_v16, %v1349_v34  ;;  %v675_v20 = vrot.slane %v650_v16, %v1355_v37  ;;  %v679_v21 = vrot.slane %v650_v16, %v1346_v33 }
 0x176   : > { %v684_v23 = vsel %vm683_vm5, %v655_v17, %v671_v19  ;;  %v685_v24 = vsel %vm683_vm5, %v659_v31, %v675_v20  ;;  %v686_v25 = vsel %vm683_vm5, %v663_v18, %v679_v21 }
 0x177   : > { %v690_v26 = vcombine.low %v684_v23, %v685_v24  ;;  %v704_v28 = vrot.slane %v686_v25, %v696_v22 }
 0x179   : > { %v697_v27 = vrot.slane %v690_v26, %v696_v22 }
 0x17b   : > { %v705_v29 = vcombine.low %v697_v27, %v704_v28 }
 0x17d   : > { %707 = vst [vmem:[#allocation10] sm:$0x3f] %v705_v29 }
 0x17e   : > { %1104 = shalt.err (!%p1101_p10)
}
 0x17f   : > { %p1466_p1 = pmov %p1465_p12 }
 0x181   : > { %911 = dma.vmem_to_hbm [thread:$0]  (%p1466_p1), %s738_s5, 96, %s1447_s4, [#allocation11]  }
 0x182   : > { %p1467_p4 = pmov %p1466_p1 }
 0x183   : > { %p1468_p6 = pmov %p1466_p1 }
 0x184   : > { %1140 = dma.done.wait (%p1467_p4), [#allocation11], 96  }
 0x185   : > { %1142 = vsyncadd (%p1468_p6), [#allocation11], 4294967200 }
 0x186 PF: > { %p932_p9 = scmp.ge.s32.totalorder %s1161_s18, 2  ;;  %s753_s20 = sand.u32 1, %s1149_s15  }
 0x187   : > { %p1469_p3 = scmp.ne.s32.totalorder %s1453_s22, 0  ;;  %s754_s25 = scalar_lea.sflag [#allocation6], %s753_s20 }
 0x189   : > { %p924_p11 = pnand %p932_p9, %p1469_p3 }
 0x18b   : > { %p925_p7 = pneg %p924_p11 }
 0x18d   : > { %1144 = dma.done.wait (%p925_p7), %s754_s25, 768  }
 0x18e   : > { %1146 = vsyncadd (%p925_p7), %s754_s25, 4294966528  ;;  %p20_p12 = scmp.ge.s32.totalorder %s1258_s27, 6   ;;  %s1470_s15 = smov %s1153_s16 }
 0x18f   : > { %s1471_s16 = smov %s1157_s17  ;;  %s1472_s17 = smov %s1275_s9 }
 0x190   : > { %s1473_s18 = smov %s1258_s27  ;;  %22 = sbr.rel (!%p20_p12) target bundleno = 7 (0x7), region = 93 }
 0x195   :  { %759 = vsyncpa [#allocation5], 1 }
 0x196   :  { %761 = vsyncpa [#allocation5 + $0x1], 1 }
 0x197   :  { %762 = vsyncpa [#allocation8], 1 }
 0x198   :  { %763 = vsyncpa [#allocation6], 1 }
 0x199   :  { %765 = vsyncpa [#allocation6 + $0x1], 1 }
 0x19a   :  { %766 = vsyncpa [#allocation11], 1 }

</bundles_post_ra>
